<compile_context>
chip_gen: v5e
topology: v5e:2x2
jax: 0.10.0
libtpu: 0.0.40
codegen_flags: <defaults>
</compile_context>

<pallas_src>
import functools

import jax
import jax.numpy as jnp
from jax.experimental import pallas as pl
from jax.experimental.pallas import tpu as pltpu


# ----------------------------- Pallas kernel --------------------------------
def _primary_caps_kernel(x_ref, w_ref, b_ref, o_ref, *, NU, OC, eps):
    # x_ref: (Bt, Pp, CKKp) bf16   w_ref: (CKKp, NU*OC) bf16
    # b_ref: (1, NU*OC) f32        o_ref: (Bt, Pp, NU*OC) f32
    Bt, Pp, CKKp = x_ref.shape
    NUC = NU * OC

    # Fold the per-step batch rows into the MXU M dimension.  Pp % 8 == 0 and
    # CKKp % 128 == 0, so this reshape is a pure layout no-op.
    x = x_ref[...].reshape(Bt * Pp, CKKp)
    w = w_ref[...]

    # All NU convolutions fused as one bf16 MXU matmul with f32 accumulation.
    s = jnp.dot(x, w, preferred_element_type=jnp.float32) + b_ref[...]   # (M, NUC)

    # Per-capsule squared norm; afterwards EVERY lane holds its own capsule's
    # |s|^2.  Lane index = u*OC + oc and the last dim is exactly NU*OC, so
    # rolling by multiples of OC cycles u while keeping oc fixed -> the whole
    # reduction is log2(NU) XLU rolls + adds (no masked slices, no tile).
    s2 = s * s
    if NU & (NU - 1) == 0:                       # power-of-two number of units
        n2 = s2
        shift = (NU // 2) * OC
        while shift >= OC:
            n2 = n2 + pltpu.roll(n2, shift=shift, axis=1)
            shift //= 2
    else:                                        # fallback: strided lane slices
        acc = s2[:, 0:OC]
        for u in range(1, NU):
            acc = acc + s2[:, u * OC:(u + 1) * OC]
        n2 = jnp.tile(acc, (1, NU))

    # squash(s) = (|s|^2/(1+|s|^2)) * s/|s| = s * sqrt(|s|^2) / (1+|s|^2)
    # TODO(synk): flip approx=True on pl.reciprocal for production; kept exact
    # here so the numerical check in __main__ stays tight.
    scale = jnp.sqrt(n2 + eps) * pl.reciprocal(1.0 + n2, approx=False)

    o_ref[...] = (s * scale).reshape(Bt, Pp, NUC).astype(o_ref.dtype)


# ------------------------------- helpers -------------------------------------
def _round_up(n, m):
    return (n + m - 1) // m * m


def _pick_block_batch(B, max_bt=8):
    """Largest Bt <= max_bt dividing B while keeping >=2 grid steps when B > 1
    (so both v7x TensorCores get work)."""
    cap = max(1, min(max_bt, B // 2 if B > 1 else 1))
    for bt in range(cap, 0, -1):
        if B % bt == 0:
            return bt
    return 1


def _resident_spec(block_shape, index_map):
    """BlockSpec for a grid-invariant operand: request a single VMEM buffer."""
    try:
        return pl.BlockSpec(block_shape, index_map, pipeline_mode=pl.Buffered(1))
    except (AttributeError, TypeError):   # older Pallas without pipeline_mode
        return pl.BlockSpec(block_shape, index_map)


def _im2col(x_nchw, K, S):
    """x: (B, C, H, W) -> patches (B, P, K*K*C), column order (kh*K + kw)*C + c.

    Built directly in the final row-major order (one small transpose of the raw
    input, no transpose of the K*K-times-inflated patch tensor).
    """
    B, C, H, W = x_nchw.shape
    Ho = (H - K) // S + 1
    Wo = (W - K) // S + 1
    x_nhwc = jnp.transpose(x_nchw, (0, 2, 3, 1))
    cols = []
    for kh in range(K):
        for kw in range(K):
            cols.append(x_nhwc[:, kh:kh + S * Ho:S, kw:kw + S * Wo:S, :])  # (B,Ho,Wo,C)
    p = jnp.stack(cols, axis=3)                      # (B, Ho, Wo, K*K, C)
    return p.reshape(B, Ho * Wo, K * K * C), Ho, Wo  # pure reshape, no transpose


# ------------------------------- wrapper -------------------------------------
def primary_caps_forward(x, weights, biases, *, kernel_size, stride,
                         compute_dtype=jnp.bfloat16, max_block_batch=8,
                         eps=1e-9, vmem_limit_bytes=48 * 1024 * 1024):
    """
    x:       (B, C, H, W) float32  (NCHW, like PyTorch)
    weights: (NU, OC, C, K, K)     per-unit conv weights
    biases:  (NU, OC)              per-unit conv biases
    returns: (B, OC * Ho * Wo, NU) squashed capsule vectors (matches PyTorch).
    """
    B, C, H, W = x.shape
    NU, OC, Cw, K, K2 = weights.shape
    assert K == kernel_size and K2 == kernel_size and Cw == C
    NUC = NU * OC

    # bf16 matmul inputs (f32 accumulation inside the kernel's jnp.dot).
    patches, Ho, Wo = _im2col(x.astype(compute_dtype), K, stride)   # (B, P, CKK)
    P, CKK = Ho * Wo, K * K * C

    # Pad P -> x8 (sublane) and CKK -> x128 (lane / MXU contraction) for clean,
    # unmasked tiles; padded contraction rows of W are zero so results match.
    Pp, CKKp = _round_up(P, 8), _round_up(CKK, 128)
    patches = jnp.pad(patches, ((0, 0), (0, Pp - P), (0, CKKp - CKK)))

    # W_mat[(kh*K + kw)*C + c, u*OC + oc] = weights[u, oc, c, kh, kw]
    w_mat = jnp.transpose(weights, (3, 4, 2, 0, 1)).reshape(CKK, NUC)
    w_mat = jnp.pad(w_mat, ((0, CKKp - CKK), (0, 0))).astype(compute_dtype)
    b_row = biases.reshape(1, NUC).astype(jnp.float32)

    bt = _pick_block_batch(B, max_block_batch)
    kernel = functools.partial(_primary_caps_kernel, NU=NU, OC=OC, eps=eps)

    # TODO(synk): on v7x (64 MiB VMEM) at production shapes, add a CKK-reduction
    # grid axis with an f32 VMEM accumulator instead of keeping W fully resident;
    # also consider fusing the im2col gather in-kernel via pl.ANY + manual DMA.
    v_flat = pl.pallas_call(
        kernel,
        out_shape=jax.ShapeDtypeStruct((B, Pp, NUC), jnp.float32),
        grid_spec=pltpu.PrefetchScalarGridSpec(
            num_scalar_prefetch=0,
            grid=(B // bt,),
            in_specs=[
                pl.BlockSpec((bt, Pp, CKKp), lambda b: (b, 0, 0)),
                # Grid-invariant weight: single-buffered (no VMEM double-buffer).
                _resident_spec((CKKp, NUC), lambda b: (0, 0)),
                pl.BlockSpec((1, NUC), lambda b: (0, 0)),
            ],
            out_specs=pl.BlockSpec((bt, Pp, NUC), lambda b: (b, 0, 0)),
        ),
        compiler_params=pltpu.CompilerParams(
            dimension_semantics=("parallel",),
            vmem_limit_bytes=vmem_limit_bytes,
        ),
    )(patches, w_mat, b_row)                                # (B, Pp, NUC) f32

    # Glue: drop row padding and reproduce the PyTorch (B, OC*Ho*Wo, NU) layout.
    v = v_flat[:, :P, :].reshape(B, P, NU, OC)
    v = v.transpose(0, 3, 1, 2)                             # (B, OC, P, NU)
    return v.reshape(B, OC * P, NU)


# ------------------------------ reference ------------------------------------
def _reference(x, weights, biases, *, kernel_size, stride):
    """Pure-JAX reference mirroring the PyTorch module, for a sanity check."""
    B = x.shape[0]
    NU, OC = weights.shape[0], weights.shape[1]
    outs = []
    for u in range(NU):
        o = jax.lax.conv_general_dilated(
            x, weights[u], window_strides=(stride, stride), padding="VALID",
            dimension_numbers=("NCHW", "OIHW", "NCHW"),
            precision=jax.lax.Precision.HIGHEST,
        ) + biases[u].reshape(1, OC, 1, 1)
        outs.append(o.reshape(B, -1, 1))
    s = jnp.concatenate(outs, axis=-1)
    n2 = jnp.sum(s * s, axis=-1, keepdims=True)
    return (n2 / (1.0 + n2)) * s / jnp.sqrt(n2)


# -------------------------------- main ----------------------------------------
if __name__ == "__main__":
    # Small shapes consistent with the module (scaled down from 256/32/9).
    B, C, H, W = 2, 4, 16, 16
    NU, OC, K, S = 8, 16, 5, 2          # num_units, out_channels, kernel, stride

    key = jax.random.PRNGKey(0)
    kx, kw, kb = jax.random.split(key, 3)

    x = jax.random.normal(kx, (B, C, H, W), dtype=jnp.float32)

    # Deterministic conv parameter init (uniform in +-1/sqrt(fan_in), like nn.Conv2d).
    fan_in = C * K * K
    bound = 1.0 / (fan_in ** 0.5)
    weights = jax.random.uniform(kw, (NU, OC, C, K, K), jnp.float32, -bound, bound)
    biases = jax.random.uniform(kb, (NU, OC), jnp.float32, -bound, bound)

    out = primary_caps_forward(x, weights, biases, kernel_size=K, stride=S)
    out = jax.block_until_ready(out)

    # The kernel's matmul inputs are bf16 (f32 accumulation), so compare against
    # a full-precision reference evaluated on the same bf16-rounded inputs.
    x_q = x.astype(jnp.bfloat16).astype(jnp.float32)
    w_q = weights.astype(jnp.bfloat16).astype(jnp.float32)
    ref = _reference(x_q, w_q, biases, kernel_size=K, stride=S)

    assert out.shape == ref.shape, (out.shape, ref.shape)
    max_err = float(jnp.max(jnp.abs(out - ref)))
    assert jnp.allclose(out, ref, atol=2e-4, rtol=2e-4), max_err

    print("KERNEL_OK")
</pallas_src>

<mosaic_0001>
module attributes {stable_mosaic.version = 11 : i64} {
  func.func @_primary_caps_kernel(%arg0: i32, %arg1: memref<1x40x128xbf16, #tpu.memory_space<vmem>>, %arg2: memref<128x128xbf16, #tpu.memory_space<vmem>>, %arg3: memref<1x128xf32, #tpu.memory_space<vmem>>, %arg4: memref<1x40x128xf32, #tpu.memory_space<vmem>>) attributes {dimension_semantics = [#tpu.dimension_semantics<parallel>], iteration_bounds = array<i64: 2>, scalar_prefetch = 0 : i64, scratch_operands = 0 : i64, tpu.core_type = #tpu.core_type<tc>, window_params = [{transform_indices = @transform_0, window_bounds = array<i64: 1, 40, 128>}, {pipeline_mode = #tpu.pipeline_mode<synchronous>, transform_indices = @transform_1, window_bounds = array<i64: 128, 128>}, {pipeline_mode = #tpu.pipeline_mode<synchronous>, transform_indices = @transform_2, window_bounds = array<i64: 1, 128>}, {transform_indices = @transform_3, window_bounds = array<i64: 1, 40, 128>}]} {
    %c0 = arith.constant 0 : index
    %c0_0 = arith.constant 0 : index
    %c0_1 = arith.constant 0 : index
    %0 = vector.load %arg1[%c0, %c0_0, %c0_1] : memref<1x40x128xbf16, #tpu.memory_space<vmem>>, vector<1x40x128xbf16>
    %1 = vector.shape_cast %0 : vector<1x40x128xbf16> to vector<40x128xbf16>
    %c0_2 = arith.constant 0 : index
    %c0_3 = arith.constant 0 : index
    %2 = vector.load %arg2[%c0_2, %c0_3] : memref<128x128xbf16, #tpu.memory_space<vmem>>, vector<128x128xbf16>
    %cst = arith.constant dense<0.000000e+00> : vector<40x128xf32>
    %3 = tpu.matmul %1, %2, %cst {dimension_numbers = #tpu.dot_dimension_numbers<[1], [0], [0], [1], [0, 0, 1, 1], [], []>} : vector<40x128xbf16>, vector<128x128xbf16>, vector<40x128xf32> -> vector<40x128xf32>
    %c0_4 = arith.constant 0 : index
    %c0_5 = arith.constant 0 : index
    %4 = vector.load %arg3[%c0_4, %c0_5] : memref<1x128xf32, #tpu.memory_space<vmem>>, vector<1x128xf32>
    %5 = vector.broadcast %4 : vector<1x128xf32> to vector<40x128xf32>
    %6 = arith.addf %3, %5 : vector<40x128xf32>
    %7 = arith.mulf %6, %6 : vector<40x128xf32>
    %c64_i32 = arith.constant 64 : i32
    %8 = tpu.dynamic_rotate %7 by %c64_i32 dim 1 : vector<40x128xf32>, i32 -> vector<40x128xf32>
    %9 = arith.addf %7, %8 : vector<40x128xf32>
    %c32_i32 = arith.constant 32 : i32
    %10 = tpu.dynamic_rotate %9 by %c32_i32 dim 1 : vector<40x128xf32>, i32 -> vector<40x128xf32>
    %11 = arith.addf %9, %10 : vector<40x128xf32>
    %c16_i32 = arith.constant 16 : i32
    %12 = tpu.dynamic_rotate %11 by %c16_i32 dim 1 : vector<40x128xf32>, i32 -> vector<40x128xf32>
    %13 = arith.addf %11, %12 : vector<40x128xf32>
    %cst_6 = arith.constant 9.99999971E-10 : f32
    %14 = vector.broadcast %cst_6 : f32 to vector<40x128xf32>
    %15 = arith.addf %13, %14 : vector<40x128xf32>
    %16 = math.sqrt %15 : vector<40x128xf32>
    %cst_7 = arith.constant 1.000000e+00 : f32
    %17 = vector.broadcast %cst_7 : f32 to vector<40x128xf32>
    %18 = arith.addf %17, %13 : vector<40x128xf32>
    %19 = tpu.reciprocal %18 : vector<40x128xf32> -> vector<40x128xf32>
    %20 = arith.mulf %16, %19 : vector<40x128xf32>
    %21 = arith.mulf %6, %20 : vector<40x128xf32>
    %22 = vector.shape_cast %21 : vector<40x128xf32> to vector<1x40x128xf32>
    %c0_8 = arith.constant 0 : index
    %c0_9 = arith.constant 0 : index
    %c0_10 = arith.constant 0 : index
    %23 = vector.load %arg4[%c0_8, %c0_9, %c0_10] : memref<1x40x128xf32, #tpu.memory_space<vmem>>, vector<1x40x128xf32>
    tpu.vector_store %arg4[%c0_8, %c0_9, %c0_10], %22 {strides = array<i32>} : memref<1x40x128xf32, #tpu.memory_space<vmem>>, vector<1x40x128xf32>,
    return
  }
  func.func @transform_0(%arg0: i32) -> (i32, i32, i32) {
    %c0_i32 = arith.constant 0 : i32
    %c0_i32_0 = arith.constant 0 : i32
    %c0_i32_1 = arith.constant 0 : i32
    return %arg0, %c0_i32, %c0_i32_0 : i32, i32, i32
  }
  func.func @transform_1(%arg0: i32) -> (i32, i32) {
    %c0_i32 = arith.constant 0 : i32
    %c0_i32_0 = arith.constant 0 : i32
    %c0_i32_1 = arith.constant 0 : i32
    return %c0_i32, %c0_i32_0 : i32, i32
  }
  func.func @transform_2(%arg0: i32) -> (i32, i32) {
    %c0_i32 = arith.constant 0 : i32
    %c0_i32_0 = arith.constant 0 : i32
    %c0_i32_1 = arith.constant 0 : i32
    return %c0_i32, %c0_i32_0 : i32, i32
  }
  func.func @transform_3(%arg0: i32) -> (i32, i32, i32) {
    %c0_i32 = arith.constant 0 : i32
    %c0_i32_0 = arith.constant 0 : i32
    %c0_i32_1 = arith.constant 0 : i32
    return %arg0, %c0_i32, %c0_i32_0 : i32, i32, i32
  }
}

</mosaic_0001>

<bundles_post_ra>
// kernel: tpu_custom_call.1
= control target key start
LH: loop header
LB: loop body
LE: loop exit
PB: predicated region body
PF: predicated region fallthrough
CT: control target
= control target key end

     0   :  { %8 = vsyncpa [#allocation3], 0  ;;  %s1254_s0 = inlined_call_operand.hbm [shape: bf16[2,40,128], index: 0, kind: input, shape index: {}]   ;;  %s1255_s1 = inlined_call_operand.hbm [shape: bf16[128,128], index: 1, kind: input, shape index: {}]   ;;  %s1256_s2 = inlined_call_operand.vmem [shape: f32[1,128], index: 2, kind: input, shape index: {}]   ;;  %s1257_s3 = inlined_call_operand.hbm [shape: f32[2,40,128], index: 3, kind: output, shape index: {}]  }
   0x1   :  { %10 = vsyncpa [#allocation3 + $0x1], 0 }
   0x2   :  { %11 = vsyncpa [#allocation6], 0 }
   0x3   :  { %12 = vsyncpa [#allocation4], 0 }
   0x4   :  { %14 = vsyncpa [#allocation4 + $0x1], 0  ;;  %s950_s12 = smov 0   ;;  %s952_s13 = smov 0  }
   0x5   :  { %s954_s14 = smov 0   ;;  %s956_s15 = smov 0  }
   0x6 LB: > { %s971_s16 = sadd.s32 4294967295, %s920_s15   ;;  %s624_s17 = sadd.s32 4294967294, %s920_s15   ;;  %s920_s15 = sphi %s956_s15, %s1275_s15   ;;  %s916_s14 = sphi %s954_s14, %s1274_s14   ;;  %s912_s13 = sphi %s952_s13, %s1273_s13   ;;  %s908_s12 = sphi %s950_s12, %s1272_s12  }
   0x7   : > { %p40_p0 = scmp.ne.s32.totalorder %s912_s13, %s908_s12  ;;  %p41_p1 = scmp.eq.s32.totalorder %s971_s16, 0 }
   0x8   : > { %p106_p2 = scmp.eq.s32.totalorder %s971_s16, 1  ;;  %p112_p3 = scmp.eq.s32.totalorder %s624_s17, 1 }
   0x9   : > { %p980_p4 = por %p41_p1, %p40_p0  ;;  %p625_p5 = scmp.ge.s32.totalorder %s920_s15, 1 }
   0xa   : > { %p985_p6 = por %p112_p3, %p40_p0  ;;  %p119_p7 = scmp.lt.s32.totalorder %s920_s15, 3 }
   0xb   : > { %s130_s22 = sshll.u32 %s1255_s1, 4  ;;  %s922_s24 = smov [#allocation5]   ;;  %s131_s22 = int_to_ptr.hbm [resolvable:$true] %s130_s22 }
   0xc   : > { %p993_p8 = pnand %p625_p5, %p119_p7  ;;  %s132_s25 = sshll.u32 %s922_s24, 4  ;;  %s133_s25 = int_to_ptr.vmem [resolvable:$true] %s132_s25 }
   0xd   : > { %s1003_s26 = sadd.s32 1, %s920_s15   ;;  %s1258_s27 = smov 64  }
   0xe   : > { %p713_p9 = pneg %p993_p8  ;;  %s924_s28 = smov 4  }
   0xf   : > { %s24_s29 = ssub.s32 %s920_s15, %s1003_s26  ;;  %s27_s30 = sadd.s32 1, %s916_s14 }
  0x10   : > { %p714_p10 = pnand %p713_p9, %p41_p1  ;;  %p25_p12 = scmp.eq.s32.totalorder %s24_s29, 0 }
  0x11   : > { %p34_p13 = scmp.ne.s32.totalorder %s916_s14, %s912_s13  ;;  %p35_p0 = scmp.eq.s32.totalorder %s920_s15, 0 }
  0x12   : > { %716 = dma.hbm_to_vmem [thread:$0]  (!%p714_p10), %s131_s22, 1024, %s133_s25, [#allocation6], %s1258_s27, %s1258_s27, %s924_s28  }
  0x13   : > { %p726_p3 = scmp.lt.s32.totalorder %s920_s15, 2  ;;  %p36_p5 = por %p35_p0, %p34_p13 }
  0x14   : > { %s1016_s4 = scalar_select %p25_p12, %s916_s14, %s27_s30  }
  0x15   : > { %p1020_p7 = por %p106_p2, %p34_p13  ;;  %s149_s6 = sand.u32 1, %s916_s14  }
  0x16   : > { %s701_s7 = smul.u32 20, %s920_s15  ;;  %p1029_p9 = pnand %p726_p3, %p36_p5 }
  0x17   : > { %s700_s8 = smul.u32 20, %s149_s6  ;;  %s150_s24 = scalar_lea.sflag [#allocation3], %s149_s6 }
  0x18   : > { %s158_s11 = scalar_lea.hbm %s1254_s0, %s701_s7  ;;  %p824_p10 = pneg %p1029_p9 }
  0x19   : > { %s159_s20 = sshll.u32 %s158_s11, 4  ;;  %s153_s21 = scalar_lea.vmem [#allocation2], %s700_s8  ;;  %s160_s20 = int_to_ptr.hbm [resolvable:$true] %s159_s20 }
  0x1a   : > { %s161_s22 = sshll.u32 %s153_s21, 4  ;;  %s820_s25 = sshra.s32 %s160_s20, 4  ;;  %s162_s22 = int_to_ptr.vmem [resolvable:$true] %s161_s22  ;;  %s821_s25 = int_to_ptr.hbm [resolvable:$true] %s820_s25 }
  0x1b   : > { %s822_s29 = scalar_lea.hbm %s821_s25, 20  ;;  %s827_s9 = scalar_lea.hbm %s1254_s0, 40 }
  0x1c   : > { %p823_p2 = scmp.ne.s32.totalorder %s821_s25, %s822_s29  ;;  %p828_p0 = scmp.lt.s32.totalorder %s821_s25, %s1254_s0 }
  0x1d   : > { %p829_p3 = scmp.lt.s32.totalorder %s827_s9, %s822_s29 }
  0x1e   : > { %p825_p12 = pnand %p824_p10, %p823_p2 }
  0x1f   : > { %p830_p5 = por %p829_p3, %p828_p0 }
  0x20   : > { %p826_p13 = pneg %p825_p12 }
  0x22   : > { %p831_p11 = pnand %p830_p5, %p826_p13 }
  0x24   : > { %834 = shalt.err (!%p831_p11)
}
  0x25   : > { %s1264_s6 = smov 64   ;;  %173 = sbr.rel (%p993_p8) target bundleno = 591 (0x24f), region = 32 }
  0x26   : > { %720 = dma.hbm_to_vmem [thread:$0]  (!%p1029_p9), %s160_s20, 320, %s162_s22, %s150_s24, %s1264_s6, %s1264_s6, %s924_s28  }
  0x27   : > { %s1049_s8 = sand.u32 (!%p993_p8), 1, %s912_s13  }
  0x28   : > { %s702_s27 = smul.u32 (!%p993_p8), 20, %s1049_s8  ;;  %s176_s11 = scalar_lea.sflag (!%p993_p8), [#allocation3], %s1049_s8 }
  0x2a   : > { %s1053_s21 = scalar_lea.vmem [#allocation2], %s702_s27 }
  0x2b   : > { %895 = dma.done.wait (%p980_p4), %s176_s11, 320  }
  0x2c   : > { %897 = vsyncadd (%p980_p4), %s176_s11, 4294966976 }
  0x2d   : > { %899 = dma.done.wait (%p41_p1), [#allocation6], 1024  }
  0x2e   : > { %901 = vsyncadd (%p41_p1), [#allocation6], 4294966272  ;;  %v683_v0 = vld [vmem:[#allocation5 + $0x38] sm:$0xff]  ;;  %v682_v1 = vld [vmem:[#allocation5 + $0x30] sm:$0xff]  ;;  %s925_s28 = smov 64   ;;  %s926_s17 = smov 32  }
  0x2f   : > { %297 = vmatpush.bf16.msra.mxu0 %v683_v0  ;;  %684 = vmatpush.bf16.msra.mxu1 %v683_v0  ;;  %v681_v2 = vld [vmem:[#allocation5 + $0x28] sm:$0xff]  ;;  %v680_v3 = vld [vmem:[#allocation5 + $0x20] sm:$0xff]  ;;  %v679_v4 = vld [vmem:[#allocation5 + $0x18] sm:$0xff]  ;;  %s927_s20 = smov 16   ;;  %s703_s22 = smul.u32 40, %s1049_s8 }
  0x30   : > { %685 = vmatpush.bf16.msra.mxu2 %v683_v0  ;;  %v678_v5 = vld [vmem:[#allocation5 + $0x10] sm:$0xff]  ;;  %v677_v6 = vld [vmem:[#allocation5 + $0x8] sm:$0xff]  ;;  %v676_v8 = vld [vmem:[#allocation5] sm:$0xff]  ;;  %s704_s25 = smul.u32 40, %s971_s16  ;;  %s526_s10 = scalar_lea.sflag [#allocation4], %s1049_s8 }
  0x31   : > { %v212_v7 = vld [vmem:[%s1053_s21 + $0x10] sm:$0xf]  ;;  %v674_v10 = vld [vmem:[%s1053_s21] sm:$0xff]  ;;  %v675_v11 = vld [vmem:[%s1053_s21 + $0x8] sm:$0xff]  ;;  %s1158_s24 = scalar_lea.vmem [#allocation7], %s703_s22  ;;  %s870_s18 = scalar_lea.hbm %s1257_s3, 80 }
  0x32   : > { %v242_v9 = vunpack.c.l.b16 %v212_v7  ;;  %v769_v13 = vld [vmem:[%s1256_s2] ss:$0 sm:$0xff]  ;;  %s537_s7 = scalar_lea.hbm %s1257_s3, %s704_s25  ;;  %s538_s16 = sshll.u32 %s1158_s24, 4  ;;  %s539_s16 = int_to_ptr.vmem [resolvable:$true] %s538_s16 }
  0x33   : > { %298 = vmatpush.bf16.msra.mxu0 %v682_v1  ;;  %686 = vmatpush.bf16.msra.mxu1 %v682_v1  ;;  %s540_s9 = sshll.u32 %s537_s7, 4  ;;  %s541_s9 = int_to_ptr.hbm [resolvable:$true] %s540_s9 }
  0x34   : > { %687 = vmatpush.bf16.msra.mxu2 %v682_v1  ;;  %v245_v12 = vpack.c.b16 %v242_v9, %v242_v9  ;;  %s864_s6 = sshra.s32 %s541_s9, 4  ;;  %s865_s6 = int_to_ptr.hbm [resolvable:$true] %s864_s6 }
  0x35   : > { %s866_s27 = scalar_lea.hbm %s865_s6, 40  ;;  %p871_p11 = scmp.lt.s32.totalorder %s865_s6, %s1257_s3 }
  0x36   : > { %p867_p1 = scmp.ne.s32.totalorder %s865_s6, %s866_s27  ;;  %p872_p9 = scmp.lt.s32.totalorder %s870_s18, %s866_s27 }
  0x37   : > { %299 = vmatpush.bf16.msra.mxu0 %v681_v2  ;;  %688 = vmatpush.bf16.msra.mxu1 %v681_v2 }
  0x38   : > { %689 = vmatpush.bf16.msra.mxu2 %v681_v2  ;;  %p868_p4 = pnand %p867_p1, %p1020_p7  ;;  %p873_p2 = por %p872_p9, %p871_p11 }
  0x3a   : > { %p869_p8 = pneg %p868_p4 }
  0x3b   : > { %300 = vmatpush.bf16.msra.mxu0 %v680_v3  ;;  %690 = vmatpush.bf16.msra.mxu1 %v680_v3 }
  0x3c   : > { %691 = vmatpush.bf16.msra.mxu2 %v680_v3  ;;  %p874_p10 = pnand %p873_p2, %p869_p8 }
  0x3f   : > { %301 = vmatpush.bf16.msra.mxu0 %v679_v4  ;;  %692 = vmatpush.bf16.msra.mxu1 %v679_v4 }
  0x40   : > { %693 = vmatpush.bf16.msra.mxu2 %v679_v4 }
  0x43   : > { %302 = vmatpush.bf16.msra.mxu0 %v678_v5  ;;  %694 = vmatpush.bf16.msra.mxu1 %v678_v5 }
  0x44   : > { %695 = vmatpush.bf16.msra.mxu2 %v678_v5 }
  0x47   : > { %303 = vmatpush.bf16.msra.mxu0 %v677_v6  ;;  %696 = vmatpush.bf16.msra.mxu1 %v677_v6 }
  0x48   : > { %697 = vmatpush.bf16.msra.mxu2 %v677_v6 }
  0x4b   : > { %304 = vmatpush.bf16.msra.mxu0 %v676_v8  ;;  %698 = vmatpush.bf16.msra.mxu1 %v676_v8 }
  0x4c   : > { %699 = vmatpush.bf16.msra.mxu2 %v676_v8 }
  0x4e   : > { %305 = vmatmul.bf16.vlgmr.msra.gmra.mxu0 %v674_v10  ;;  %310 = vmatmul.bf16.vlgmr.msra.gmra.mxu1 %v675_v11 }
  0x4f   : > { %315 = vmatmul.bf16.vlgmr.msra.gmra.mxu2 %v245_v12 }
  0xcb   : > { %v306_v14 = vpop.f32.mrf.mxu0  ;;  %v311_v15 = vpop.f32.mrf.mxu1 }
  0xcc   : > { %v1069_v16 = vadd.f32 %v769_v13, %v306_v14  ;;  %v1071_v17 = vadd.f32 %v769_v13, %v311_v15 }
  0xce   : > { %v322_v18 = vmul.f32 %v1071_v17, %v1071_v17  ;;  %v320_v19 = vmul.f32 %v1069_v16, %v1069_v16 }
  0xd0   : > { %329 = vrot.lane.b32.xlu1 %v322_v18, %s925_s28  ;;  %325 = vrot.lane.b32.xlu0 %v320_v19, %s925_s28 }
  0xd2   : > { %v316_v20 = vpop.f32.mrf.mxu2 }
  0xd3   : > { %v1077_v21 = vadd.f32 %v769_v13, %v316_v20  ;;  %v308_v22 = vpop.f32.mrf.mxu0  ;;  %v313_v23 = vpop.f32.mrf.mxu1 }
  0xd4   : > { %v1079_v24 = vadd.f32 %v769_v13, %v308_v22  ;;  %v1081_v25 = vadd.f32 %v769_v13, %v313_v23 }
  0xd5   : > { %v324_v26 = vmul.f32 %v1077_v21, %v1077_v21 }
  0xd6   : > { %v321_v27 = vmul.f32 %v1079_v24, %v1079_v24  ;;  %v323_v28 = vmul.f32 %v1081_v25, %v1081_v25 }
  0xd7   : > { %333 = vrot.lane.b32.xlu2 %v324_v26, %s925_s28 }
  0xd8   : > { %331 = vrot.lane.b32.xlu1 %v323_v28, %s925_s28  ;;  %327 = vrot.lane.b32.xlu0 %v321_v27, %s925_s28 }
  0xda   : > { %v318_v29 = vpop.f32.mrf.mxu2 }
 0x131   : > { %v334_v38 = vpop.permute.xlu2 %333 }
 0x132   : > { %v339_v39 = vadd.f32 %v334_v38, %v324_v26 }
 0x142   : > { %v330_v30 = vpop.permute.xlu1 %329  ;;  %v326_v31 = vpop.permute.xlu0 %325 }
 0x143   : > { %v337_v32 = vadd.f32 %v330_v30, %v322_v18  ;;  %v335_v33 = vadd.f32 %v326_v31, %v320_v19 }
 0x145   : > { %344 = vrot.lane.b32.xlu1 %v337_v32, %s926_s17  ;;  %340 = vrot.lane.b32.xlu2 %v335_v33, %s926_s17 }
 0x14a   : > { %v332_v34 = vpop.permute.xlu1 %331  ;;  %v328_v35 = vpop.permute.xlu0 %327 }
 0x14b   : > { %v338_v36 = vadd.f32 %v332_v34, %v323_v28  ;;  %v336_v37 = vadd.f32 %v328_v35, %v321_v27 }
 0x14d   : > { %346 = vrot.lane.b32.xlu2 %v338_v36, %s926_s17  ;;  %342 = vrot.lane.b32.xlu0 %v336_v37, %s926_s17 }
 0x155   : > { %348 = vrot.lane.b32.xlu0 %v339_v39, %s926_s17 }
 0x19f   : > { %v341_v40 = vpop.permute.xlu2 %340 }
 0x1a0   : > { %v350_v41 = vadd.f32 %v341_v40, %v335_v33 }
 0x1a2   : > { %355 = vrot.lane.b32.xlu1 %v350_v41, %s927_s20 }
 0x1a7   : > { %v347_v42 = vpop.permute.xlu2 %346 }
 0x1a8   : > { %v353_v43 = vadd.f32 %v347_v42, %v338_v36 }
 0x1aa   : > { %361 = vrot.lane.b32.xlu1 %v353_v43, %s927_s20 }
 0x1b7   : > { %v345_v44 = vpop.permute.xlu1 %344 }
 0x1b8   : > { %v1089_v45 = vadd.f32 %v345_v44, %v337_v32 }
 0x1ba   : > { %359 = vrot.lane.b32.xlu0 %v1089_v45, %s927_s20 }
 0x1bf   : > { %v343_v46 = vpop.permute.xlu0 %342 }
 0x1c0   : > { %v351_v47 = vadd.f32 %v343_v46, %v336_v37 }
 0x1c2   : > { %357 = vrot.lane.b32.xlu2 %v351_v47, %s927_s20 }
 0x1c7   : > { %v349_v48 = vpop.permute.xlu0 %348 }
 0x1c8   : > { %v354_v49 = vadd.f32 %v349_v48, %v339_v39 }
 0x1ca   : > { %363 = vrot.lane.b32.xlu2 %v354_v49, %s927_s20 }
 0x214   : > { %v356_v50 = vpop.permute.xlu1 %355 }
 0x215   : > { %v365_v51 = vadd.f32 %v356_v50, %v350_v41 }
 0x217   : > { %v1092_v52 = vadd.f32 1e-09, %v365_v51  ;;  %v435_v53 = vadd.f32 1.0, %v365_v51 }
 0x219   : > { %770 = vrsqrt.f32 %v1092_v52  ;;  %v449_v5 = vand.u32 2147483647, %v435_v53  ;;  %v451_v6 = vand.u32 2147483648, %v435_v53  ;;  %vm382_vm1 = vcmp.eq.f32.partialorder %v1092_v52, inf }
 0x21a   : > { %772 = vrcp.f32 %v435_v53  ;;  %vm384_vm2 = vcmp.eq.f32.partialorder %v1092_v52, 0.0  ;;  %v385_v11 = vand.u32 2147483648, %v1092_v52  ;;  %vm445_vm3 = vweird.f32 %v435_v53 }
 0x21b   : > { %vm450_vm5 = vcmp.eq.f32.partialorder %v449_v5, 8.507059e+37  ;;  %v452_v18 = vor.u32 1.1754944e-38, %v451_v6 }
 0x21c   : > { %v362_v54 = vpop.permute.xlu1 %361  ;;  %v358_v55 = vpop.permute.xlu2 %357 }
 0x21d   : > { %v368_v56 = vadd.f32 %v362_v54, %v353_v43  ;;  %v366_v57 = vadd.f32 %v358_v55, %v351_v47 }
 0x21f   : > { %v771_v58 = vpop.eup %770  ;;  %v1095_v59 = vadd.f32 1e-09, %v368_v56  ;;  %v1097_v60 = vadd.f32 1.0, %v368_v56  ;;  %v1100_v63 = vadd.f32 1e-09, %v366_v57  ;;  %v1104_v2 = vadd.f32 1.0, %v366_v57 }
 0x220   : > { %v773_v61 = vpop.eup %772  ;;  %v376_v62 = vmul.f32 %v771_v58, %v1092_v52 }
 0x221   : > { %v441_v0 = vmul.f32 %v773_v61, %v435_v53  ;;  %774 = vrsqrt.f32 %v1095_v59  ;;  %vm446_vm0 = vweird.f32 %v773_v61  ;;  %v421_v22 = vand.u32 2147483648, %v1095_v59 }
 0x222   : > { %v377_v1 = vmul.f32 %v771_v58, %v376_v62  ;;  %776 = vrcp.f32 %v1097_v60  ;;  %vm447_vm4 = vmor %vm445_vm3, %vm446_vm0  ;;  %v491_v26 = vand.u32 2147483647, %v1097_v60  ;;  %v493_v30 = vand.u32 2147483648, %v1097_v60 }
 0x223   : > { %v442_v3 = vsub.f32 1.0, %v441_v0  ;;  %778 = vrsqrt.f32 %v1100_v63  ;;  %vm418_vm6 = vcmp.eq.f32.partialorder %v1095_v59, inf  ;;  %vm420_vm8 = vcmp.eq.f32.partialorder %v1095_v59, 0.0 }
 0x224   : > { %v378_v4 = vmul.f32 0.5, %v377_v1  ;;  %v364_v7 = vpop.permute.xlu2 %363  ;;  %780 = vrcp.f32 %v1104_v2  ;;  %vm487_vm9 = vweird.f32 %v1097_v60  ;;  %vm394_vm10 = vcmp.eq.f32.partialorder %v1100_v63, inf }
 0x225   : > { %v443_v8 = vmul.f32 %v773_v61, %v442_v3  ;;  %v369_v13 = vadd.f32 %v364_v7, %v354_v49  ;;  %vm1140_vm11 = vcmp.eq.f32.partialorder %v491_v26, 8.507059e+37  ;;  %vm396_vm12 = vcmp.eq.f32.partialorder %v1100_v63, 0.0 }
 0x226   : > { %v379_v9 = vsub.f32 1.5, %v378_v4  ;;  %v494_v54 = vor.u32 1.1754944e-38, %v493_v30  ;;  %vm459_vm15 = vweird.f32 %v1104_v2  ;;  %v463_v1 = vand.u32 2147483647, %v1104_v2 }
 0x227   : > { %v775_v10 = vpop.eup %774  ;;  %v444_v12 = vadd.f32 %v773_v61, %v443_v8  ;;  %v1120_v31 = vadd.f32 1e-09, %v369_v13  ;;  %v1131_v38 = vadd.f32 1.0, %v369_v13  ;;  %v397_v13 = vand.u32 2147483648, %v1100_v63 }
 0x228   : > { %v1111_v14 = vpop.eup %776  ;;  %v380_v15 = vmul.f32 %v771_v58, %v379_v9  ;;  %v412_v19 = vmul.f32 %v775_v10, %v1095_v59 }
 0x229   : > { %v448_v20 = vsel %vm447_vm4, %v773_v61, %v444_v12  ;;  %v483_v23 = vmul.f32 %v1111_v14, %v1097_v60  ;;  %v779_v27 = vpop.eup %778  ;;  %vm488_vm7 = vweird.f32 %v1111_v14  ;;  %782 = vrsqrt.f32 %v1120_v31 }
 0x22a   : > { %v381_v28 = vmul.f32 %v380_v15, %v1092_v52  ;;  %v413_v29 = vmul.f32 %v775_v10, %v412_v19  ;;  %v453_v32 = vsel %vm450_vm5, %v452_v18, %v448_v20  ;;  %v388_v34 = vmul.f32 %v779_v27, %v1100_v63  ;;  %v781_v35 = vpop.eup %780  ;;  %vm1148_vm13 = vmor %vm487_vm9, %vm488_vm7 }
 0x22b   : > { %v484_v33 = vsub.f32 1.0, %v483_v23  ;;  %v455_v42 = vmul.f32 %v781_v35, %v1104_v2  ;;  %784 = vrcp.f32 %v1131_v38  ;;  %vm460_vm14 = vweird.f32 %v781_v35 }
 0x22c   : > { %v383_v36 = vsel %vm382_vm1, %v1092_v52, %v381_v28  ;;  %v414_v37 = vmul.f32 0.5, %v413_v29  ;;  %v389_v41 = vmul.f32 %v779_v27, %v388_v34  ;;  %v360_v50 = vpop.permute.xlu0 %359  ;;  %v465_v60 = vand.u32 2147483648, %v1104_v2  ;;  %vm1172_vm0 = vmor %vm459_vm15, %vm460_vm14 }
 0x22d   : > { %v386_v39 = vsel %vm384_vm2, %v385_v11, %v383_v36  ;;  %v485_v40 = vmul.f32 %v1111_v14, %v484_v33  ;;  %v456_v49 = vsub.f32 1.0, %v455_v42  ;;  %v367_v61 = vadd.f32 %v360_v50, %v1089_v45 }
 0x22e   : > { %v510_v43 = vmul.f32 %v453_v32, %v386_v39  ;;  %v415_v44 = vsub.f32 1.5, %v414_v37  ;;  %v390_v48 = vmul.f32 0.5, %v389_v41  ;;  %vm464_vm1 = vcmp.eq.f32.partialorder %v463_v1, 8.507059e+37 }
 0x22f   : > { %v486_v46 = vadd.f32 %v1111_v14, %v485_v40  ;;  %v457_v57 = vmul.f32 %v781_v35, %v456_v49  ;;  %v783_v58 = vpop.eup %782  ;;  %v1176_v7 = vadd.f32 1e-09, %v367_v61  ;;  %v1178_v45 = vadd.f32 1.0, %v367_v61 }
 0x230   : > { %v515_v51 = vmul.f32 %v510_v43, %v1069_v16  ;;  %v416_v52 = vmul.f32 %v775_v10, %v415_v44  ;;  %v391_v56 = vsub.f32 1.5, %v390_v48  ;;  %v424_v3 = vmul.f32 %v783_v58, %v1120_v31 }
 0x231   : > { %v490_v55 = vsel %vm1148_vm13, %v1111_v14, %v486_v46  ;;  %v458_v0 = vadd.f32 %v781_v35, %v457_v57  ;;  %v785_v11 = vpop.eup %784  ;;  %v466_v14 = vor.u32 1.1754944e-38, %v465_v60  ;;  %786 = vrsqrt.f32 %v1176_v7 }
 0x232   : > { %520 = vst [vmem:[%s1158_s24] sm:$0xff] %v515_v51  ;;  %v417_v16 = vmul.f32 %v416_v52, %v1095_v59  ;;  %v392_v62 = vmul.f32 %v779_v27, %v391_v56  ;;  %v495_v5 = vsel %vm1140_vm11, %v494_v54, %v490_v55  ;;  %v425_v10 = vmul.f32 %v783_v58, %v424_v3 }
 0x233   : > { %v462_v9 = vsel %vm1172_vm0, %v781_v35, %v458_v0  ;;  %v497_v18 = vmul.f32 %v785_v11, %v1131_v38  ;;  %788 = vrcp.f32 %v1178_v45  ;;  %v505_v28 = vand.u32 2147483647, %v1131_v38 }
 0x234   : > { %v419_v4 = vsel %vm418_vm6, %v1095_v59, %v417_v16  ;;  %v393_v8 = vmul.f32 %v392_v62, %v1100_v63  ;;  %v426_v59 = vmul.f32 0.5, %v425_v10  ;;  %v507_v29 = vand.u32 2147483648, %v1131_v38 }
 0x235   : > { %v422_v2 = vsel %vm420_vm8, %v421_v22, %v419_v4  ;;  %v467_v22 = vsel %vm464_vm1, %v466_v14, %v462_v9  ;;  %v498_v27 = vsub.f32 1.0, %v497_v18  ;;  %vm502_vm2 = vweird.f32 %v785_v11 }
 0x236   : > { %v513_v12 = vmul.f32 %v495_v5, %v422_v2  ;;  %v395_v15 = vsel %vm394_vm10, %v1100_v63, %v393_v8  ;;  %v427_v26 = vsub.f32 1.5, %v426_v59  ;;  %vm501_vm3 = vweird.f32 %v1131_v38 }
 0x237   : > { %v398_v20 = vsel %vm396_vm12, %v397_v13, %v395_v15  ;;  %v499_v33 = vmul.f32 %v785_v11, %v498_v27  ;;  %vm430_vm4 = vcmp.eq.f32.partialorder %v1120_v31, inf  ;;  %vm432_vm5 = vcmp.eq.f32.partialorder %v1120_v31, 0.0  ;;  %vm503_vm6 = vmor %vm501_vm3, %vm502_vm2 }
 0x238   : > { %v518_v19 = vmul.f32 %v513_v12, %v1081_v25  ;;  %v511_v23 = vmul.f32 %v467_v22, %v398_v20  ;;  %v428_v32 = vmul.f32 %v783_v58, %v427_v26  ;;  %v787_v25 = vpop.eup %786  ;;  %v433_v36 = vand.u32 2147483648, %v1120_v31 }
 0x239   : > { %v500_v34 = vadd.f32 %v785_v11, %v499_v33  ;;  %v400_v35 = vmul.f32 %v787_v25, %v1176_v7  ;;  %v789_v37 = vpop.eup %788  ;;  %vm506_vm7 = vcmp.eq.f32.partialorder %v505_v28, 8.507059e+37  ;;  %v479_v51 = vand.u32 2147483648, %v1178_v45 }
 0x23a   : > { %523 = vst [vmem:[%s1158_s24 + $0x18] sm:$0xff] %v518_v19  ;;  %v516_v30 = vmul.f32 %v511_v23, %v1079_v24  ;;  %v429_v63 = vmul.f32 %v428_v32, %v1120_v31  ;;  %v508_v24 = vor.u32 1.1754944e-38, %v507_v29  ;;  %v469_v43 = vmul.f32 %v789_v37, %v1178_v45 }
 0x23b   : > { %v504_v40 = vsel %vm503_vm6, %v785_v11, %v500_v34  ;;  %v401_v41 = vmul.f32 %v787_v25, %v400_v35  ;;  %vm474_vm8 = vweird.f32 %v789_v37  ;;  %v477_v52 = vand.u32 2147483647, %v1178_v45 }
 0x23c   : > { %521 = vst [vmem:[%s1158_s24 + $0x8] sm:$0xff] %v516_v30  ;;  %v431_v39 = vsel %vm430_vm4, %v1120_v31, %v429_v63  ;;  %v509_v38 = vsel %vm506_vm7, %v508_v24, %v504_v40  ;;  %v470_v47 = vsub.f32 1.0, %v469_v43  ;;  %vm473_vm9 = vweird.f32 %v1178_v45 }
 0x23d   : > { %v434_v42 = vsel %vm432_vm5, %v433_v36, %v431_v39  ;;  %v402_v46 = vmul.f32 0.5, %v401_v41  ;;  %vm475_vm10 = vmor %vm473_vm9, %vm474_vm8  ;;  %vm406_vm11 = vcmp.eq.f32.partialorder %v1176_v7, inf  ;;  %v480_v56 = vor.u32 1.1754944e-38, %v479_v51 }
 0x23e   : > { %v514_v44 = vmul.f32 %v509_v38, %v434_v42  ;;  %v471_v50 = vmul.f32 %v789_v37, %v470_v47  ;;  %vm408_vm12 = vcmp.eq.f32.partialorder %v1176_v7, 0.0  ;;  %vm478_vm13 = vcmp.eq.f32.partialorder %v477_v52, 8.507059e+37 }
 0x23f   : > { %v403_v49 = vsub.f32 1.5, %v402_v46 }
 0x240   : > { %v519_v48 = vmul.f32 %v514_v44, %v1077_v21  ;;  %v472_v53 = vadd.f32 %v789_v37, %v471_v50  ;;  %v409_v21 = vand.u32 2147483648, %v1176_v7 }
 0x241   : > { %v404_v31 = vmul.f32 %v787_v25, %v403_v49 }
 0x242   : > { %524 = vst [vmem:[%s1158_s24 + $0x20] sm:$0xff] %v519_v48  ;;  %v476_v55 = vsel %vm475_vm10, %v789_v37, %v472_v53 }
 0x243   : > { %v405_v54 = vmul.f32 %v404_v31, %v1176_v7  ;;  %v481_v16 = vsel %vm478_vm13, %v480_v56, %v476_v55 }
 0x245   : > { %v407_v57 = vsel %vm406_vm11, %v1176_v7, %v405_v54 }
 0x246   : > { %v410_v58 = vsel %vm408_vm12, %v409_v21, %v407_v57 }
 0x247   : > { %v512_v60 = vmul.f32 %v481_v16, %v410_v58 }
 0x249   : > { %v517_v61 = vmul.f32 %v512_v60, %v1071_v17 }
 0x24b   : > { %522 = vst [vmem:[%s1158_s24 + $0x10] sm:$0xff] %v517_v61 }
 0x24c   : > { %877 = shalt.err (!%p874_p10)
}
 0x24d   : > { %s928_s8 = smov 128   ;;  %s929_s17 = smov 8  }
 0x24e   : > { %711 = dma.vmem_to_hbm [thread:$0]  (%p1020_p7), %s539_s16, 640, %s541_s9, %s526_s10, %s928_s8, %s928_s8, %s929_s17  }
 0x24f PF: > { %s555_s20 = sand.u32 1, %s908_s12   ;;  %p1271_p12 = scmp.ge.s32.totalorder %s920_s15, 2 }
 0x250   : > { %s556_s22 = scalar_lea.sflag [#allocation4], %s555_s20 }
 0x251   : > { %p722_p13 = pnand %p1271_p12, %p985_p6 }
 0x253   : > { %p723_p0 = pneg %p722_p13 }
 0x255   : > { %903 = dma.done.wait (%p723_p0), %s556_s22, 640  }
 0x256   : > { %905 = vsyncadd (%p723_p0), %s556_s22, 4294966656  ;;  %p17_p3 = scmp.ge.s32.totalorder %s1003_s26, 4   ;;  %s1272_s12 = smov %s912_s13 }
 0x257   : > { %s1273_s13 = smov %s916_s14  ;;  %s1274_s14 = smov %s1016_s4 }
 0x258   : > { %s1275_s15 = smov %s1003_s26  ;;  %19 = sbr.rel (!%p17_p3) target bundleno = 6 (0x6), region = 81 }
 0x25d   :  { %562 = vsyncpa [#allocation3], 1 }
 0x25e   :  { %564 = vsyncpa [#allocation3 + $0x1], 1 }
 0x25f   :  { %565 = vsyncpa [#allocation6], 1 }
 0x260   :  { %566 = vsyncpa [#allocation4], 1 }
 0x261   :  { %568 = vsyncpa [#allocation4 + $0x1], 1 }

</bundles_post_ra>
